<compile_context>
chip_gen: v6e
topology: v6e:2x2x1
jax: 0.10.0
libtpu: 0.0.40
codegen_flags: <defaults>
</compile_context>

<pallas_src>
import math
from functools import partial

import jax
import jax.numpy as jnp
from jax.experimental import pallas as pl
from jax.experimental.pallas import tpu as pltpu


_LANE_W = 512          # lane-dense last dim (multiple of 128)
_MAX_TILE_ROWS = 1024  # f32 block = 1024*512*4 = 2 MiB; double-buffered in+out ~8 MiB


# ---------------------------------------------------------------------------
# Activation math (VPU/EUP inside the kernel body)
# ---------------------------------------------------------------------------
def _apply_activation(x, hidden_act: str):
    act = hidden_act.lower()
    if act == "relu":
        return jnp.maximum(x, 0.0)
    elif act == "tanh":
        return jnp.tanh(x)
    elif act == "swish":
        return x * jax.nn.sigmoid(x)
    elif act == "gelu":
        # gelu_new (tanh approximation), exactly as in the PyTorch module.
        c = math.sqrt(2.0 / math.pi)
        return 0.5 * x * (1.0 + jnp.tanh(c * (x + 0.044715 * (x * x * x))))
    elif act == "leakyrelu":
        # nn.functional.leaky_relu default negative_slope = 0.01
        return jnp.where(x >= 0.0, x, 0.01 * x)
    else:
        raise ValueError(f"unsupported hidden_act: {hidden_act}")


# ---------------------------------------------------------------------------
# Pallas kernel
# ---------------------------------------------------------------------------
def _activation_kernel(x_ref, o_ref, *, hidden_act: str):
    x = x_ref[...].astype(jnp.float32)  # single upcast per tile (no-op for f32)
    o_ref[...] = _apply_activation(x, hidden_act).astype(o_ref.dtype)


def _round_up(a: int, b: int) -> int:
    return (a + b - 1) // b * b


def activation_forward(x: jax.Array, hidden_act: str) -> jax.Array:
    """Elementwise activation, computed in a tiled, pipelined Pallas TPU kernel."""
    orig_shape = x.shape
    n = x.size
    if n == 0:
        return x

    flat = x.reshape(-1)

    itemsize = jnp.dtype(x.dtype).itemsize
    sublane = max(8, 32 // itemsize)  # 8 for f32, 16 for bf16, 32 for int8/fp8

    rows = pl.cdiv(n, _LANE_W)
    tile_r = min(_MAX_TILE_ROWS, _round_up(rows, sublane))
    rows_padded = _round_up(rows, tile_r)
    n_padded = rows_padded * _LANE_W

    if n_padded != n:
        # Zero padding is safe for all supported activations (f(0) == 0).
        flat = jnp.pad(flat, (0, n_padded - n))
    x2d = flat.reshape(rows_padded, _LANE_W)

    grid = (rows_padded // tile_r,)

    is_transcendental = hidden_act.lower() in ("tanh", "swish", "gelu")
    cost = pl.CostEstimate(
        flops=8 * n_padded,
        transcendentals=n_padded if is_transcendental else 0,
        bytes_accessed=2 * n_padded * itemsize,
    )

    out2d = pl.pallas_call(
        partial(_activation_kernel, hidden_act=hidden_act),
        out_shape=jax.ShapeDtypeStruct((rows_padded, _LANE_W), x.dtype),
        grid=grid,
        in_specs=[pl.BlockSpec((tile_r, _LANE_W), lambda i: (i, 0))],
        out_specs=pl.BlockSpec((tile_r, _LANE_W), lambda i: (i, 0)),
        compiler_params=pltpu.CompilerParams(
            dimension_semantics=("parallel",),
        ),
        cost_estimate=cost,
    )(x2d)

    out_flat = out2d.reshape(-1)
    if n_padded != n:
        out_flat = out_flat[:n]
    return out_flat.reshape(orig_shape)


# ---------------------------------------------------------------------------
# Pure-JAX reference (mirrors the PyTorch module; f32 math, cast back)
# ---------------------------------------------------------------------------
def activation_ref(x: jax.Array, hidden_act: str) -> jax.Array:
    return _apply_activation(x.astype(jnp.float32), hidden_act).astype(x.dtype)


if __name__ == "__main__":
    key = jax.random.PRNGKey(0)
    ok = True

    # Small transformer-like hidden state: (batch, seq, hidden) with hidden < 128
    # (exercises the lane-dense repack + tail padding path).
    x_small = jax.random.normal(key, (2, 8, 32), dtype=jnp.float32)
    for act in ["relu", "tanh", "swish", "gelu", "leakyrelu"]:
        out = jax.block_until_ready(activation_forward(x_small, act))
        ref = activation_ref(x_small, act)
        if not jnp.allclose(out, ref, atol=1e-5, rtol=1e-5):
            ok = False
            print(f"MISMATCH (small, {act}): max abs err "
                  f"{float(jnp.max(jnp.abs(out - ref)))}")

    # Multi-tile path: 2*1024*512 f32 elements -> 2048 rows -> 2 grid steps.
    key2 = jax.random.PRNGKey(0)
    x_big = jax.random.normal(key2, (2, 1024, 512), dtype=jnp.float32)
    out = jax.block_until_ready(activation_forward(x_big, "gelu"))
    ref = activation_ref(x_big, "gelu")
    if not jnp.allclose(out, ref, atol=1e-5, rtol=1e-5):
        ok = False
        print(f"MISMATCH (big, gelu): max abs err "
              f"{float(jnp.max(jnp.abs(out - ref)))}")

    # bf16 path (exercises 16-row sublane packing + in-kernel f32 upcast).
    x_bf16 = jax.random.normal(jax.random.PRNGKey(0), (3, 7, 96),
                               dtype=jnp.float32).astype(jnp.bfloat16)
    out = jax.block_until_ready(activation_forward(x_bf16, "swish"))
    ref = activation_ref(x_bf16, "swish")
    if not jnp.allclose(out.astype(jnp.float32), ref.astype(jnp.float32),
                        atol=1e-2, rtol=1e-2):
        ok = False
        print(f"MISMATCH (bf16, swish): max abs err "
              f"{float(jnp.max(jnp.abs(out.astype(jnp.float32) - ref.astype(jnp.float32))))}")

    if ok:
        print("KERNEL_OK")
</pallas_src>

<mosaic_0001>
module attributes {stable_mosaic.version = 11 : i64} {
  func.func @_activation_kernel(%arg0: i32, %arg1: memref<8x512xf32, #tpu.memory_space<vmem>>, %arg2: memref<8x512xf32, #tpu.memory_space<vmem>>) attributes {dimension_semantics = [#tpu.dimension_semantics<parallel>], iteration_bounds = array<i64: 1>, scalar_prefetch = 0 : i64, scratch_operands = 0 : i64, tpu.core_type = #tpu.core_type<tc>, window_params = [{transform_indices = @transform_0, window_bounds = array<i64: 8, 512>}, {transform_indices = @transform_1, window_bounds = array<i64: 8, 512>}]} {
    %c0 = arith.constant 0 : index
    %c0_0 = arith.constant 0 : index
    %0 = vector.load %arg1[%c0, %c0_0] : memref<8x512xf32, #tpu.memory_space<vmem>>, vector<8x512xf32>
    %cst = arith.constant 0.000000e+00 : f32
    %1 = vector.broadcast %cst : f32 to vector<8x512xf32>
    %2 = arith.maximumf %0, %1 : vector<8x512xf32>
    %c0_1 = arith.constant 0 : index
    %c0_2 = arith.constant 0 : index
    %3 = vector.load %arg2[%c0_1, %c0_2] : memref<8x512xf32, #tpu.memory_space<vmem>>, vector<8x512xf32>
    tpu.vector_store %arg2[%c0_1, %c0_2], %2 {strides = array<i32>} : memref<8x512xf32, #tpu.memory_space<vmem>>, vector<8x512xf32>,
    return
  }
  func.func @transform_0(%arg0: i32) -> (i32, i32) {
    %c0_i32 = arith.constant 0 : i32
    %c0_i32_0 = arith.constant 0 : i32
    return %arg0, %c0_i32 : i32, i32
  }
  func.func @transform_1(%arg0: i32) -> (i32, i32) {
    %c0_i32 = arith.constant 0 : i32
    %c0_i32_0 = arith.constant 0 : i32
    return %arg0, %c0_i32 : i32, i32
  }
}

</mosaic_0001>

<bundles_post_ra>
// kernel: tpu_custom_call.1
= control target key start
LH: loop header
LB: loop body
LE: loop exit
PB: predicated region body
PF: predicated region fallthrough
CT: control target
= control target key end

     0   :  { %6 = vsyncpa [#allocation3], 0  ;;  %s112_s0 = inlined_call_operand.hbm [shape: f32[8,512], index: 0, kind: input, shape index: {}]   ;;  %s113_s1 = inlined_call_operand.hbm [shape: f32[8,512], index: 1, kind: output, shape index: {}]  }
   0x1   :  { %7 = vsyncpa [#allocation4], 0  ;;  %s94_s6 = smov [#allocation2]  }
   0x2   :  { %s14_s7 = sshll.u32 %s94_s6, 4  ;;  %s15_s7 = int_to_ptr.vmem [resolvable:$true] %s14_s7 }
   0x3   :  { %s58_s8 = scalar_lea.vmem %s15_s7, 512  ;;  %p63_p1 = scmp.lt.s32.totalorder %s15_s7, %s15_s7 }
   0x4   :  { %p59_p0 = scmp.ne.s32.totalorder %s15_s7, %s58_s8  ;;  %p64_p2 = scmp.lt.s32.totalorder %s58_s8, %s58_s8 }
   0x6   :  { %p65_p3 = por %p64_p2, %p63_p1 }
   0x8   :  { %p66_p4 = pnand %p65_p3, %p59_p0 }
   0xa   :  { %69 = shalt.err (!%p66_p4)
}
   0xb   :  { %17 = dma.hbm_to_vmem [thread:$0]  %s112_s0, 512, %s15_s7, [#allocation3]  }
   0xc   :  { %90 = dma.done.wait [#allocation3], 512  }
   0xd   :  { %91 = vsyncadd [#allocation3], 4294966784  ;;  %s95_s11 = smov [#allocation5]   ;;  %v21_v0 = vld [vmem:[#allocation2] sm:$0xff]  ;;  %v22_v1 = vld [vmem:[#allocation2 + $0x8] sm:$0xff] }
   0xe   :  { %s39_s12 = sshll.u32 %s95_s11, 4  ;;  %v23_v2 = vld [vmem:[#allocation2 + $0x10] sm:$0xff]  ;;  %v25_v3 = vmax.f32 %v21_v0, 0.0  ;;  %v26_v4 = vmax.f32 %v22_v1, 0.0  ;;  %v24_v6 = vld [vmem:[#allocation2 + $0x18] sm:$0xff]  ;;  %s40_s12 = int_to_ptr.vmem [resolvable:$true] %s39_s12 }
   0xf   :  { %v27_v5 = vmax.f32 %v23_v2, 0.0  ;;  %v28_v7 = vmax.f32 %v24_v6, 0.0  ;;  %s70_s13 = scalar_lea.vmem %s40_s12, 512  ;;  %p75_p6 = scmp.lt.s32.totalorder %s40_s12, %s40_s12 }
  0x10   :  { %29 = vst [vmem:[#allocation5] sm:$0xff] %v25_v3  ;;  %30 = vst [vmem:[#allocation5 + $0x8] sm:$0xff] %v26_v4  ;;  %p71_p5 = scmp.ne.s32.totalorder %s40_s12, %s70_s13  ;;  %p76_p7 = scmp.lt.s32.totalorder %s70_s13, %s70_s13 }
  0x11   :  { %31 = vst [vmem:[#allocation5 + $0x10] sm:$0xff] %v27_v5  ;;  %32 = vst [vmem:[#allocation5 + $0x18] sm:$0xff] %v28_v7 }
  0x12   :  { %p77_p8 = por %p76_p7, %p75_p6 }
  0x14   :  { %p78_p9 = pnand %p77_p8, %p71_p5 }
  0x16   :  { %81 = shalt.err (!%p78_p9)
}
  0x17   :  { %42 = dma.vmem_to_hbm [thread:$0]  %s40_s12, 512, %s113_s1, [#allocation4]  }
  0x18   :  { %92 = dma.done.wait [#allocation4], 512  }
  0x19   :  { %93 = vsyncadd [#allocation4], 4294966784 }
  0x1a   :  { %46 = vsyncpa [#allocation3], 1 }
  0x1b   :  { %47 = vsyncpa [#allocation4], 1 }

</bundles_post_ra>
